<compile_context>
chip_gen: v7x
topology: tpu7x:2x2x1
jax: 0.10.0
libtpu: 0.0.40
codegen_flags: <defaults>
</compile_context>

<pallas_src>
import functools
import math

import jax
import jax.numpy as jnp
from jax import lax
from jax.experimental import pallas as pl
from jax.experimental.pallas import tpu as pltpu


def _round_up(x, m):
    return ((x + m - 1) // m) * m


def _dtype_bytes(dt):
    return jnp.dtype(dt).itemsize


def _vmem_limit(need_bytes):
    # Floor at 32 MiB (>= default scoped limit on all gens), cap at v7x's 64 MiB physical.
    return int(min(max(need_bytes + (4 << 20), 32 << 20), 64 << 20))


# ----------------------------- GraphConv kernels ------------------------------
def _agg_linear_kernel(a_ref, x_ref, wt_ref, b_ref, o_ref, acc_ref):
    """o = (A @ x) @ W^T + b, accumulating A@x over the k grid axis (Fin <= Fout path)."""
    k = pl.program_id(1)

    @pl.when(k == 0)
    def _():
        acc_ref[...] = jnp.zeros_like(acc_ref)

    acc_ref[...] += jnp.dot(a_ref[...], x_ref[...],
                            preferred_element_type=jnp.float32)

    @pl.when(k == pl.num_programs(1) - 1)
    def _():
        o = jnp.dot(acc_ref[...].astype(wt_ref.dtype), wt_ref[...],
                    preferred_element_type=jnp.float32)
        o_ref[...] = (o + b_ref[...]).astype(o_ref.dtype)


def _agg_bias_kernel(a_ref, xw_ref, b_ref, o_ref, acc_ref):
    """o = A @ xw + b  (xw = x @ W^T precomputed; Fin > Fout reordered path)."""
    k = pl.program_id(1)

    @pl.when(k == 0)
    def _():
        acc_ref[...] = jnp.zeros_like(acc_ref)

    acc_ref[...] += jnp.dot(a_ref[...], xw_ref[...],
                            preferred_element_type=jnp.float32)

    @pl.when(k == pl.num_programs(1) - 1)
    def _():
        o_ref[...] = (acc_ref[...] + b_ref[...]).astype(o_ref.dtype)


def _linear_kernel(x_ref, wt_ref, o_ref):
    """o = x @ W^T  (W^T resident, rows tiled)."""
    o_ref[...] = jnp.dot(x_ref[...], wt_ref[...],
                         preferred_element_type=jnp.float32).astype(o_ref.dtype)


def graphconv_agg_linear(A_p, x_p, Wt_p, b_p, *, tm, tk, out_dtype):
    """(A @ x) @ W^T + b.  A_p [Np,Np], x_p [Np,Fin], Wt_p [Fin,Fout], b_p [1,Fout]."""
    Np = A_p.shape[0]
    Fin = x_p.shape[1]
    Fout = Wt_p.shape[1]
    in_b = _dtype_bytes(A_p.dtype)
    out_b = _dtype_bytes(out_dtype)
    grid = (Np // tm, Np // tk)
    flops = 2 * Np * Np * Fin + 2 * Np * Fin * Fout
    bytes_accessed = (Np * Np * in_b                      # A read once
                      + grid[0] * Np * Fin * in_b         # x re-streamed per row tile
                      + Fin * Fout * in_b + Fout * 4      # W^T + bias (resident)
                      + Np * Fout * out_b)                # output
    need = (2 * tm * tk * in_b + 2 * tk * Fin * in_b + 2 * Fin * Fout * in_b
            + 2 * Fout * 4 + 2 * tm * Fout * out_b + tm * Fin * 4)
    return pl.pallas_call(
        _agg_linear_kernel,
        out_shape=jax.ShapeDtypeStruct((Np, Fout), out_dtype),
        grid_spec=pltpu.PrefetchScalarGridSpec(
            num_scalar_prefetch=0,
            grid=grid,
            in_specs=[
                pl.BlockSpec((tm, tk), lambda i, k: (i, k)),      # A tile
                pl.BlockSpec((tk, Fin), lambda i, k: (k, 0)),     # x row tile
                pl.BlockSpec((Fin, Fout), lambda i, k: (0, 0)),   # W^T, resident
                pl.BlockSpec((1, Fout), lambda i, k: (0, 0)),     # bias, resident
            ],
            out_specs=pl.BlockSpec((tm, Fout), lambda i, k: (i, 0)),
            scratch_shapes=[pltpu.VMEM((tm, Fin), jnp.float32)],
        ),
        compiler_params=pltpu.CompilerParams(
            dimension_semantics=("parallel", "arbitrary"),
            vmem_limit_bytes=_vmem_limit(need)),
        cost_estimate=pl.CostEstimate(flops=flops, transcendentals=0,
                                      bytes_accessed=bytes_accessed),
    )(A_p, x_p, Wt_p, b_p)


def graphconv_agg_bias(A_p, xw_p, b_p, *, tm, tk, out_dtype):
    """A @ xw + b.  A_p [Np,Np], xw_p [Np,Fout], b_p [1,Fout]."""
    Np = A_p.shape[0]
    Fout = xw_p.shape[1]
    in_b = _dtype_bytes(A_p.dtype)
    out_b = _dtype_bytes(out_dtype)
    grid = (Np // tm, Np // tk)
    flops = 2 * Np * Np * Fout
    bytes_accessed = (Np * Np * in_b + grid[0] * Np * Fout * in_b
                      + Fout * 4 + Np * Fout * out_b)
    need = (2 * tm * tk * in_b + 2 * tk * Fout * in_b + 2 * Fout * 4
            + 2 * tm * Fout * out_b + tm * Fout * 4)
    return pl.pallas_call(
        _agg_bias_kernel,
        out_shape=jax.ShapeDtypeStruct((Np, Fout), out_dtype),
        grid_spec=pltpu.PrefetchScalarGridSpec(
            num_scalar_prefetch=0,
            grid=grid,
            in_specs=[
                pl.BlockSpec((tm, tk), lambda i, k: (i, k)),      # A tile
                pl.BlockSpec((tk, Fout), lambda i, k: (k, 0)),    # xW row tile
                pl.BlockSpec((1, Fout), lambda i, k: (0, 0)),     # bias, resident
            ],
            out_specs=pl.BlockSpec((tm, Fout), lambda i, k: (i, 0)),
            scratch_shapes=[pltpu.VMEM((tm, Fout), jnp.float32)],
        ),
        compiler_params=pltpu.CompilerParams(
            dimension_semantics=("parallel", "arbitrary"),
            vmem_limit_bytes=_vmem_limit(need)),
        cost_estimate=pl.CostEstimate(flops=flops, transcendentals=0,
                                      bytes_accessed=bytes_accessed),
    )(A_p, xw_p, b_p)


def linear_padded(x_p, Wt_p, *, tm, out_dtype):
    """x @ W^T (no bias) — small pre-transform for the reordered A@(xW^T) path."""
    Np, Fin = x_p.shape
    Fout = Wt_p.shape[1]
    in_b = _dtype_bytes(x_p.dtype)
    out_b = _dtype_bytes(out_dtype)
    grid = (Np // tm,)
    flops = 2 * Np * Fin * Fout
    bytes_accessed = Np * Fin * in_b + Fin * Fout * in_b + Np * Fout * out_b
    need = 2 * tm * Fin * in_b + 2 * Fin * Fout * in_b + 2 * tm * Fout * out_b
    return pl.pallas_call(
        _linear_kernel,
        out_shape=jax.ShapeDtypeStruct((Np, Fout), out_dtype),
        grid_spec=pltpu.PrefetchScalarGridSpec(
            num_scalar_prefetch=0,
            grid=grid,
            in_specs=[
                pl.BlockSpec((tm, Fin), lambda i: (i, 0)),
                pl.BlockSpec((Fin, Fout), lambda i: (0, 0)),      # W^T, resident
            ],
            out_specs=pl.BlockSpec((tm, Fout), lambda i: (i, 0)),
        ),
        compiler_params=pltpu.CompilerParams(
            dimension_semantics=("parallel",),
            vmem_limit_bytes=_vmem_limit(need)),
        cost_estimate=pl.CostEstimate(flops=flops, transcendentals=0,
                                      bytes_accessed=bytes_accessed),
    )(x_p, Wt_p)


# --------------------- InnerProductDecoder: adj = z @ z^T ---------------------
def _decoder_resident_kernel(zi_ref, zall_ref, o_ref):
    # j-side z is fully resident in VMEM; slice the needed (tn, F) rows.
    tn = o_ref.shape[1]
    j = pl.program_id(1)
    start = pl.multiple_of(j * tn, tn)
    zj = zall_ref[pl.ds(start, tn), :]
    o_ref[...] = lax.dot_general(
        zi_ref[...], zj,
        dimension_numbers=(((1,), (1,)), ((), ())),
        preferred_element_type=jnp.float32).astype(o_ref.dtype)


def _decoder_tiled_kernel(zi_ref, zj_ref, o_ref):
    o_ref[...] = lax.dot_general(
        zi_ref[...], zj_ref[...],
        dimension_numbers=(((1,), (1,)), ((), ())),
        preferred_element_type=jnp.float32).astype(o_ref.dtype)


def inner_product_decoder_padded(z_p, *, tm, tn, out_dtype=jnp.float32):
    Np, Fp = z_p.shape
    in_b = _dtype_bytes(z_p.dtype)
    out_b = _dtype_bytes(out_dtype)
    grid = (Np // tm, Np // tn)
    flops = 2 * Np * Np * Fp
    # TODO(synk): downstream-permitting, out_dtype could be bf16 to halve the N^2 write.
    if Np * Fp * in_b <= (8 << 20):
        kernel = _decoder_resident_kernel
        j_spec = pl.BlockSpec((Np, Fp), lambda i, j: (0, 0))      # whole z, resident
        bytes_accessed = 2 * Np * Fp * in_b + Np * Np * out_b
        need = 2 * tm * Fp * in_b + 2 * Np * Fp * in_b + 2 * tm * tn * out_b
    else:
        kernel = _decoder_tiled_kernel
        j_spec = pl.BlockSpec((tn, Fp), lambda i, j: (j, 0))
        bytes_accessed = Np * Fp * in_b + grid[0] * Np * Fp * in_b + Np * Np * out_b
        need = 2 * tm * Fp * in_b + 2 * tn * Fp * in_b + 2 * tm * tn * out_b
    return pl.pallas_call(
        kernel,
        out_shape=jax.ShapeDtypeStruct((Np, Np), out_dtype),
        grid_spec=pltpu.PrefetchScalarGridSpec(
            num_scalar_prefetch=0,
            grid=grid,
            in_specs=[pl.BlockSpec((tm, Fp), lambda i, j: (i, 0)), j_spec],
            out_specs=pl.BlockSpec((tm, tn), lambda i, j: (i, j)),
        ),
        compiler_params=pltpu.CompilerParams(
            dimension_semantics=("parallel", "parallel"),
            vmem_limit_bytes=_vmem_limit(need)),
        cost_estimate=pl.CostEstimate(flops=flops, transcendentals=0,
                                      bytes_accessed=bytes_accessed),
    )(z_p, z_p)


# --------------------------------- model glue ---------------------------------
def init_params(key, in_feats, n_hidden, n_layers):
    """Deterministic param init mirroring nn.Linear shapes (W:[out,in], b:[out])."""
    params = []
    dims = [in_feats] + [n_hidden] * n_layers
    for l in range(n_layers):
        key, kw, kb = jax.random.split(key, 3)
        bound = 1.0 / math.sqrt(dims[l])
        W = jax.random.uniform(kw, (dims[l + 1], dims[l]), jnp.float32, -bound, bound)
        b = jax.random.uniform(kb, (dims[l + 1],), jnp.float32, -bound, bound)
        params.append((W, b))
    return tuple(params)


def _choose_geometry(N, *, tm, tk, td):
    np0 = _round_up(max(N, 1), 128)
    tm = min(tm, np0)
    tk = min(tk, np0)
    td = min(td, np0)
    # All tiles are power-of-two multiples of 128, so max == lcm.
    Np = _round_up(N, max(tm, tk, td))
    return Np, tm, tk, td


def gcnae_prepare(A, features, params, *, tm=512, tk=256, td=512,
                  compute_dtype=jnp.bfloat16):
    """One-time pad / cast / weight-transpose, hoisted out of the steady-state forward."""
    N = A.shape[0]
    Np, tm, tk, td = _choose_geometry(N, tm=tm, tk=tk, td=td)
    A_p = jnp.pad(A, ((0, Np - N), (0, Np - N))).astype(compute_dtype)
    fin = features.shape[1]
    fin_p = _round_up(fin, 128)
    x_p = jnp.pad(features, ((0, Np - N), (0, fin_p - fin))).astype(compute_dtype)
    layers = []
    for (W, b) in params:
        fout = W.shape[0]
        fout_p = _round_up(fout, 128)
        Wt_p = jnp.pad(W.T, ((0, fin_p - W.shape[1]), (0, fout_p - fout))).astype(compute_dtype)
        b_p = jnp.pad(b, (0, fout_p - fout)).reshape(1, fout_p).astype(jnp.float32)
        layers.append((Wt_p, b_p))
        fin_p = fout_p
    return dict(A_p=A_p, x_p=x_p, layers=tuple(layers), N=N,
                F_last=params[-1][0].shape[0], tm=tm, tk=tk, td=td,
                compute_dtype=compute_dtype)


@functools.partial(jax.jit, static_argnames=("tm", "tk", "td", "compute_dtype"))
def _gcnae_forward_padded(A_p, x_p, layers, *, tm, tk, td, compute_dtype):
    n_layers = len(layers)
    x = x_p
    for idx, (Wt_p, b_p) in enumerate(layers):
        last = (idx == n_layers - 1)
        # Final layer stored f32 (matches PyTorch output dtype); intermediates in
        # compute_dtype to halve inter-layer HBM traffic.  Accumulation is f32.
        out_dtype = jnp.float32 if last else compute_dtype
        fin_p, fout_p = Wt_p.shape
        if fin_p > fout_p:
            # (A@x)@W^T == A@(x@W^T): do the cheap linear first, stream the narrow xW.
            xw = linear_padded(x, Wt_p, tm=tm, out_dtype=compute_dtype)
            x = graphconv_agg_bias(A_p, xw, b_p, tm=tm, tk=tk, out_dtype=out_dtype)
        else:
            x = graphconv_agg_linear(A_p, x, Wt_p, b_p, tm=tm, tk=tk, out_dtype=out_dtype)
    z_f32 = x
    adj_p = inner_product_decoder_padded(z_f32.astype(compute_dtype), tm=td, tn=td)
    return adj_p, z_f32


def gcnae_forward(prepared):
    adj_p, z_p = _gcnae_forward_padded(
        prepared["A_p"], prepared["x_p"], prepared["layers"],
        tm=prepared["tm"], tk=prepared["tk"], td=prepared["td"],
        compute_dtype=prepared["compute_dtype"])
    N = prepared["N"]
    F_last = prepared["F_last"]
    return adj_p[:N, :N], z_p[:N, :F_last]


# ------------------------------------ main -------------------------------------
def _max_rel_err(a, b):
    return float(jnp.max(jnp.abs(a.astype(jnp.float32) - b)) /
                 (jnp.max(jnp.abs(b)) + 1e-6))


if __name__ == "__main__":
    def run_case(seed, N, in_feats, n_hidden, n_layers, tol):
        key = jax.random.PRNGKey(seed)
        k_a, k_f, k_p = jax.random.split(key, 3)
        A = jax.random.uniform(k_a, (N, N), jnp.float32)
        features = jax.random.normal(k_f, (N, in_feats), jnp.float32)
        params = init_params(k_p, in_feats, n_hidden, n_layers)

        prepared = gcnae_prepare(A, features, params)
        adj_rec, x_out = gcnae_forward(prepared)
        jax.block_until_ready((adj_rec, x_out))

        # Plain-JAX f32 reference (bf16 streams -> loose, max-normalized tolerance).
        x_ref = features
        for (W, b) in params:
            x_ref = (A @ x_ref) @ W.T + b
        adj_ref = x_ref @ x_ref.T
        ex = _max_rel_err(x_out, x_ref)
        ea = _max_rel_err(adj_rec, adj_ref)
        assert ex < tol, f"x mismatch (rel err {ex})"
        assert ea < tol, f"adj mismatch (rel err {ea})"

    # Case 1: module-sized example (fused aggregate -> linear epilogue path).
    run_case(0, N=16, in_feats=8, n_hidden=32, n_layers=2, tol=2e-2)
    # Case 2: wide input features (reordered A @ (x W^T) path + linear kernel).
    run_case(1, N=200, in_feats=300, n_hidden=32, n_layers=2, tol=2e-2)

    print("KERNEL_OK")
</pallas_src>

<mosaic_0001>
module attributes {stable_mosaic.version = 11 : i64} {
  func.func @_agg_linear_kernel(%arg0: i32, %arg1: i32, %arg2: memref<128x128xbf16, #tpu.memory_space<vmem>>, %arg3: memref<128x128xbf16, #tpu.memory_space<vmem>>, %arg4: memref<128x128xbf16, #tpu.memory_space<vmem>>, %arg5: memref<1x128xf32, #tpu.memory_space<vmem>>, %arg6: memref<128x128xbf16, #tpu.memory_space<vmem>>, %arg7: memref<128x128xf32, #tpu.memory_space<vmem>>) attributes {dimension_semantics = [#tpu.dimension_semantics<parallel>, #tpu.dimension_semantics<arbitrary>], iteration_bounds = array<i64: 1, 1>, scalar_prefetch = 0 : i64, scratch_operands = 1 : i64, tpu.core_type = #tpu.core_type<tc>, window_params = [{transform_indices = @transform_0, window_bounds = array<i64: 128, 128>}, {transform_indices = @transform_1, window_bounds = array<i64: 128, 128>}, {pipeline_mode = #tpu.pipeline_mode<synchronous>, transform_indices = @transform_2, window_bounds = array<i64: 128, 128>}, {pipeline_mode = #tpu.pipeline_mode<synchronous>, transform_indices = @transform_3, window_bounds = array<i64: 1, 128>}, {transform_indices = @transform_4, window_bounds = array<i64: 128, 128>}]} {
    %c0_i32 = arith.constant 0 : i32
    %0 = arith.cmpi eq, %arg1, %c0_i32 : i32
    %1 = arith.extui %0 : i1 to i32
    %c0_i32_0 = arith.constant 0 : i32
    %2 = arith.cmpi ne, %1, %c0_i32_0 : i32
    scf.if %2 {
      %cst_10 = arith.constant 0.000000e+00 : f32
      %12 = vector.broadcast %cst_10 : f32 to vector<128x128xf32>
      %c0_11 = arith.constant 0 : index
      %c0_12 = arith.constant 0 : index
      %13 = vector.load %arg7[%c0_11, %c0_12] : memref<128x128xf32, #tpu.memory_space<vmem>>, vector<128x128xf32>
      tpu.vector_store %arg7[%c0_11, %c0_12], %12 {strides = array<i32>} : memref<128x128xf32, #tpu.memory_space<vmem>>, vector<128x128xf32>,
    } else {
    }
    %c0 = arith.constant 0 : index
    %c0_1 = arith.constant 0 : index
    %3 = vector.load %arg7[%c0, %c0_1] : memref<128x128xf32, #tpu.memory_space<vmem>>, vector<128x128xf32>
    %c0_2 = arith.constant 0 : index
    %c0_3 = arith.constant 0 : index
    %4 = vector.load %arg2[%c0_2, %c0_3] : memref<128x128xbf16, #tpu.memory_space<vmem>>, vector<128x128xbf16>
    %c0_4 = arith.constant 0 : index
    %c0_5 = arith.constant 0 : index
    %5 = vector.load %arg3[%c0_4, %c0_5] : memref<128x128xbf16, #tpu.memory_space<vmem>>, vector<128x128xbf16>
    %cst = arith.constant dense<0.000000e+00> : vector<128x128xf32>
    %6 = tpu.matmul %4, %5, %cst {dimension_numbers = #tpu.dot_dimension_numbers<[1], [0], [0], [1], [0, 0, 1, 1], [], []>} : vector<128x128xbf16>, vector<128x128xbf16>, vector<128x128xf32> -> vector<128x128xf32>
    %7 = arith.addf %3, %6 : vector<128x128xf32>
    %c0_6 = arith.constant 0 : index
    %c0_7 = arith.constant 0 : index
    %8 = vector.load %arg7[%c0_6, %c0_7] : memref<128x128xf32, #tpu.memory_space<vmem>>, vector<128x128xf32>
    tpu.vector_store %arg7[%c0_6, %c0_7], %7 {strides = array<i32>} : memref<128x128xf32, #tpu.memory_space<vmem>>, vector<128x128xf32>,
    %c0_i32_8 = arith.constant 0 : i32
    %9 = arith.cmpi eq, %arg1, %c0_i32_8 : i32
    %10 = arith.extui %9 : i1 to i32
    %c0_i32_9 = arith.constant 0 : i32
    %11 = arith.cmpi ne, %10, %c0_i32_9 : i32
    scf.if %11 {
      %c0_10 = arith.constant 0 : index
      %c0_11 = arith.constant 0 : index
      %12 = vector.load %arg7[%c0_10, %c0_11] : memref<128x128xf32, #tpu.memory_space<vmem>>, vector<128x128xf32>
      %13 = arith.truncf %12 : vector<128x128xf32> to vector<128x128xbf16>
      %c0_12 = arith.constant 0 : index
      %c0_13 = arith.constant 0 : index
      %14 = vector.load %arg4[%c0_12, %c0_13] : memref<128x128xbf16, #tpu.memory_space<vmem>>, vector<128x128xbf16>
      %cst_14 = arith.constant dense<0.000000e+00> : vector<128x128xf32>
      %15 = tpu.matmul %13, %14, %cst_14 {dimension_numbers = #tpu.dot_dimension_numbers<[1], [0], [0], [1], [0, 0, 1, 1], [], []>} : vector<128x128xbf16>, vector<128x128xbf16>, vector<128x128xf32> -> vector<128x128xf32>
      %c0_15 = arith.constant 0 : index
      %c0_16 = arith.constant 0 : index
      %16 = vector.load %arg5[%c0_15, %c0_16] : memref<1x128xf32, #tpu.memory_space<vmem>>, vector<1x128xf32>
      %17 = vector.broadcast %16 : vector<1x128xf32> to vector<128x128xf32>
      %18 = arith.addf %15, %17 : vector<128x128xf32>
      %19 = arith.truncf %18 : vector<128x128xf32> to vector<128x128xbf16>
      %c0_17 = arith.constant 0 : index
      %c0_18 = arith.constant 0 : index
      %20 = vector.load %arg6[%c0_17, %c0_18] : memref<128x128xbf16, #tpu.memory_space<vmem>>, vector<128x128xbf16>
      tpu.vector_store %arg6[%c0_17, %c0_18], %19 {strides = array<i32>} : memref<128x128xbf16, #tpu.memory_space<vmem>>, vector<128x128xbf16>,
    } else {
    }
    return
  }
  func.func @transform_0(%arg0: i32, %arg1: i32) -> (i32, i32) {
    %c0_i32 = arith.constant 0 : i32
    return %arg0, %arg1 : i32, i32
  }
  func.func @transform_1(%arg0: i32, %arg1: i32) -> (i32, i32) {
    %c0_i32 = arith.constant 0 : i32
    %c0_i32_0 = arith.constant 0 : i32
    return %arg1, %c0_i32 : i32, i32
  }
  func.func @transform_2(%arg0: i32, %arg1: i32) -> (i32, i32) {
    %c0_i32 = arith.constant 0 : i32
    %c0_i32_0 = arith.constant 0 : i32
    %c0_i32_1 = arith.constant 0 : i32
    return %c0_i32, %c0_i32_0 : i32, i32
  }
  func.func @transform_3(%arg0: i32, %arg1: i32) -> (i32, i32) {
    %c0_i32 = arith.constant 0 : i32
    %c0_i32_0 = arith.constant 0 : i32
    %c0_i32_1 = arith.constant 0 : i32
    return %c0_i32, %c0_i32_0 : i32, i32
  }
  func.func @transform_4(%arg0: i32, %arg1: i32) -> (i32, i32) {
    %c0_i32 = arith.constant 0 : i32
    %c0_i32_0 = arith.constant 0 : i32
    return %arg0, %c0_i32 : i32, i32
  }
}

module attributes {stable_mosaic.version = 11 : i64} {
  func.func @_decoder_resident_kernel(%arg0: i32, %arg1: i32, %arg2: memref<128x128xbf16, #tpu.memory_space<vmem>>, %arg3: memref<128x128xbf16, #tpu.memory_space<vmem>>, %arg4: memref<128x128xf32, #tpu.memory_space<vmem>>) attributes {dimension_semantics = [#tpu.dimension_semantics<parallel>, #tpu.dimension_semantics<parallel>], iteration_bounds = array<i64: 1, 1>, scalar_prefetch = 0 : i64, scratch_operands = 0 : i64, tpu.core_type = #tpu.core_type<tc>, window_params = [{transform_indices = @transform_0, window_bounds = array<i64: 128, 128>}, {pipeline_mode = #tpu.pipeline_mode<synchronous>, transform_indices = @transform_1, window_bounds = array<i64: 128, 128>}, {transform_indices = @transform_2, window_bounds = array<i64: 128, 128>}]} {
    %c128_i32 = arith.constant 128 : i32
    %0 = arith.muli %arg1, %c128_i32 : i32
    %1 = tpu.assume_multiple %0, 128 : i32
    %2 = arith.index_cast %1 : i32 to index
    %c0 = arith.constant 0 : index
    %3 = vector.load %arg3[%2, %c0] : memref<128x128xbf16, #tpu.memory_space<vmem>>, vector<128x128xbf16>
    %c0_0 = arith.constant 0 : index
    %c0_1 = arith.constant 0 : index
    %4 = vector.load %arg2[%c0_0, %c0_1] : memref<128x128xbf16, #tpu.memory_space<vmem>>, vector<128x128xbf16>
    %cst = arith.constant dense<0.000000e+00> : vector<128x128xf32>
    %5 = tpu.matmul %4, %3, %cst {dimension_numbers = #tpu.dot_dimension_numbers<[1], [1], [0], [0], [0, 0, 1, 0], [], []>} : vector<128x128xbf16>, vector<128x128xbf16>, vector<128x128xf32> -> vector<128x128xf32>
    %c0_2 = arith.constant 0 : index
    %c0_3 = arith.constant 0 : index
    %6 = vector.load %arg4[%c0_2, %c0_3] : memref<128x128xf32, #tpu.memory_space<vmem>>, vector<128x128xf32>
    tpu.vector_store %arg4[%c0_2, %c0_3], %5 {strides = array<i32>} : memref<128x128xf32, #tpu.memory_space<vmem>>, vector<128x128xf32>,
    return
  }
  func.func @transform_0(%arg0: i32, %arg1: i32) -> (i32, i32) {
    %c0_i32 = arith.constant 0 : i32
    %c0_i32_0 = arith.constant 0 : i32
    return %arg0, %c0_i32 : i32, i32
  }
  func.func @transform_1(%arg0: i32, %arg1: i32) -> (i32, i32) {
    %c0_i32 = arith.constant 0 : i32
    %c0_i32_0 = arith.constant 0 : i32
    %c0_i32_1 = arith.constant 0 : i32
    return %c0_i32, %c0_i32_0 : i32, i32
  }
  func.func @transform_2(%arg0: i32, %arg1: i32) -> (i32, i32) {
    %c0_i32 = arith.constant 0 : i32
    return %arg0, %arg1 : i32, i32
  }
}

module attributes {stable_mosaic.version = 11 : i64} {
  func.func @_agg_linear_kernel(%arg0: i32, %arg1: i32, %arg2: memref<128x128xbf16, #tpu.memory_space<vmem>>, %arg3: memref<128x128xbf16, #tpu.memory_space<vmem>>, %arg4: memref<128x128xbf16, #tpu.memory_space<vmem>>, %arg5: memref<1x128xf32, #tpu.memory_space<vmem>>, %arg6: memref<128x128xf32, #tpu.memory_space<vmem>>, %arg7: memref<128x128xf32, #tpu.memory_space<vmem>>) attributes {dimension_semantics = [#tpu.dimension_semantics<parallel>, #tpu.dimension_semantics<arbitrary>], iteration_bounds = array<i64: 1, 1>, scalar_prefetch = 0 : i64, scratch_operands = 1 : i64, tpu.core_type = #tpu.core_type<tc>, window_params = [{transform_indices = @transform_0, window_bounds = array<i64: 128, 128>}, {transform_indices = @transform_1, window_bounds = array<i64: 128, 128>}, {pipeline_mode = #tpu.pipeline_mode<synchronous>, transform_indices = @transform_2, window_bounds = array<i64: 128, 128>}, {pipeline_mode = #tpu.pipeline_mode<synchronous>, transform_indices = @transform_3, window_bounds = array<i64: 1, 128>}, {transform_indices = @transform_4, window_bounds = array<i64: 128, 128>}]} {
    %c0_i32 = arith.constant 0 : i32
    %0 = arith.cmpi eq, %arg1, %c0_i32 : i32
    %1 = arith.extui %0 : i1 to i32
    %c0_i32_0 = arith.constant 0 : i32
    %2 = arith.cmpi ne, %1, %c0_i32_0 : i32
    scf.if %2 {
      %cst_10 = arith.constant 0.000000e+00 : f32
      %12 = vector.broadcast %cst_10 : f32 to vector<128x128xf32>
      %c0_11 = arith.constant 0 : index
      %c0_12 = arith.constant 0 : index
      %13 = vector.load %arg7[%c0_11, %c0_12] : memref<128x128xf32, #tpu.memory_space<vmem>>, vector<128x128xf32>
      tpu.vector_store %arg7[%c0_11, %c0_12], %12 {strides = array<i32>} : memref<128x128xf32, #tpu.memory_space<vmem>>, vector<128x128xf32>,
    } else {
    }
    %c0 = arith.constant 0 : index
    %c0_1 = arith.constant 0 : index
    %3 = vector.load %arg7[%c0, %c0_1] : memref<128x128xf32, #tpu.memory_space<vmem>>, vector<128x128xf32>
    %c0_2 = arith.constant 0 : index
    %c0_3 = arith.constant 0 : index
    %4 = vector.load %arg2[%c0_2, %c0_3] : memref<128x128xbf16, #tpu.memory_space<vmem>>, vector<128x128xbf16>
    %c0_4 = arith.constant 0 : index
    %c0_5 = arith.constant 0 : index
    %5 = vector.load %arg3[%c0_4, %c0_5] : memref<128x128xbf16, #tpu.memory_space<vmem>>, vector<128x128xbf16>
    %cst = arith.constant dense<0.000000e+00> : vector<128x128xf32>
    %6 = tpu.matmul %4, %5, %cst {dimension_numbers = #tpu.dot_dimension_numbers<[1], [0], [0], [1], [0, 0, 1, 1], [], []>} : vector<128x128xbf16>, vector<128x128xbf16>, vector<128x128xf32> -> vector<128x128xf32>
    %7 = arith.addf %3, %6 : vector<128x128xf32>
    %c0_6 = arith.constant 0 : index
    %c0_7 = arith.constant 0 : index
    %8 = vector.load %arg7[%c0_6, %c0_7] : memref<128x128xf32, #tpu.memory_space<vmem>>, vector<128x128xf32>
    tpu.vector_store %arg7[%c0_6, %c0_7], %7 {strides = array<i32>} : memref<128x128xf32, #tpu.memory_space<vmem>>, vector<128x128xf32>,
    %c0_i32_8 = arith.constant 0 : i32
    %9 = arith.cmpi eq, %arg1, %c0_i32_8 : i32
    %10 = arith.extui %9 : i1 to i32
    %c0_i32_9 = arith.constant 0 : i32
    %11 = arith.cmpi ne, %10, %c0_i32_9 : i32
    scf.if %11 {
      %c0_10 = arith.constant 0 : index
      %c0_11 = arith.constant 0 : index
      %12 = vector.load %arg7[%c0_10, %c0_11] : memref<128x128xf32, #tpu.memory_space<vmem>>, vector<128x128xf32>
      %13 = arith.truncf %12 : vector<128x128xf32> to vector<128x128xbf16>
      %c0_12 = arith.constant 0 : index
      %c0_13 = arith.constant 0 : index
      %14 = vector.load %arg4[%c0_12, %c0_13] : memref<128x128xbf16, #tpu.memory_space<vmem>>, vector<128x128xbf16>
      %cst_14 = arith.constant dense<0.000000e+00> : vector<128x128xf32>
      %15 = tpu.matmul %13, %14, %cst_14 {dimension_numbers = #tpu.dot_dimension_numbers<[1], [0], [0], [1], [0, 0, 1, 1], [], []>} : vector<128x128xbf16>, vector<128x128xbf16>, vector<128x128xf32> -> vector<128x128xf32>
      %c0_15 = arith.constant 0 : index
      %c0_16 = arith.constant 0 : index
      %16 = vector.load %arg5[%c0_15, %c0_16] : memref<1x128xf32, #tpu.memory_space<vmem>>, vector<1x128xf32>
      %17 = vector.broadcast %16 : vector<1x128xf32> to vector<128x128xf32>
      %18 = arith.addf %15, %17 : vector<128x128xf32>
      %c0_17 = arith.constant 0 : index
      %c0_18 = arith.constant 0 : index
      %19 = vector.load %arg6[%c0_17, %c0_18] : memref<128x128xf32, #tpu.memory_space<vmem>>, vector<128x128xf32>
      tpu.vector_store %arg6[%c0_17, %c0_18], %18 {strides = array<i32>} : memref<128x128xf32, #tpu.memory_space<vmem>>, vector<128x128xf32>,
    } else {
    }
    return
  }
  func.func @transform_0(%arg0: i32, %arg1: i32) -> (i32, i32) {
    %c0_i32 = arith.constant 0 : i32
    return %arg0, %arg1 : i32, i32
  }
  func.func @transform_1(%arg0: i32, %arg1: i32) -> (i32, i32) {
    %c0_i32 = arith.constant 0 : i32
    %c0_i32_0 = arith.constant 0 : i32
    return %arg1, %c0_i32 : i32, i32
  }
  func.func @transform_2(%arg0: i32, %arg1: i32) -> (i32, i32) {
    %c0_i32 = arith.constant 0 : i32
    %c0_i32_0 = arith.constant 0 : i32
    %c0_i32_1 = arith.constant 0 : i32
    return %c0_i32, %c0_i32_0 : i32, i32
  }
  func.func @transform_3(%arg0: i32, %arg1: i32) -> (i32, i32) {
    %c0_i32 = arith.constant 0 : i32
    %c0_i32_0 = arith.constant 0 : i32
    %c0_i32_1 = arith.constant 0 : i32
    return %c0_i32, %c0_i32_0 : i32, i32
  }
  func.func @transform_4(%arg0: i32, %arg1: i32) -> (i32, i32) {
    %c0_i32 = arith.constant 0 : i32
    %c0_i32_0 = arith.constant 0 : i32
    return %arg0, %c0_i32 : i32, i32
  }
}

</mosaic_0001>

<bundles_post_ra>
// kernel: _gcnae_forward_padded.5
= control target key start
LH: loop header
LB: loop body
LE: loop exit
PB: predicated region body
PF: predicated region fallthrough
CT: control target
= control target key end

     0   :  { %s478_s0 = inlined_call_operand.vmem [shape: bf16[128,128], index: 0, kind: input, shape index: {}, may-alias: {0,1}]   ;;  %s479_s1 = inlined_call_operand.vmem [shape: bf16[128,128], index: 1, kind: input, shape index: {}, may-alias: {0,1}]   ;;  %s480_s2 = inlined_call_operand.hbm [shape: f32[128,128], index: 2, kind: output, shape index: {}]  }
   0x1   :  { %v360_v0 = vld [vmem:[%s479_s1] sm:$0xff]   ;;  %v361_v1 = vld [vmem:[%s479_s1 + $0x8] sm:$0xff]   ;;  %v362_v2 = vld [vmem:[%s479_s1 + $0x10] sm:$0xff]  }
   0x2   :  { %309 = vmatprep.subr.bf16.mxu0 %v360_v0  ;;  %341 = vmatprep.subr.bf16.mxu1 %v360_v0  ;;  %v368_v3 = vld [vmem:[%s478_s0] sm:$0xff]   ;;  %v363_v5 = vld [vmem:[%s479_s1 + $0x18] sm:$0xff]  }
   0x3   :  { %310 = vmatpush3.bf16.xpose.msra.mxu0 %v360_v0  ;;  %349 = vmatpush3.bf16.xpose.msra.mxu1 %v360_v0  ;;  %v369_v4 = vld [vmem:[%s478_s0 + $0x20] sm:$0xff]  }
   0x4   :  { %311 = vmatprep.subr.bf16.mxu0 %v361_v1  ;;  %342 = vmatprep.subr.bf16.mxu1 %v361_v1 }
   0x5   :  { %325 = vmatprep.mubr.bf16.mxu0 %v368_v3  ;;  %333 = vmatprep.mubr.bf16.mxu1 %v369_v4 }
   0xb   :  { %312 = vmatpush3.bf16.xpose.msra.mxu0 %v361_v1  ;;  %350 = vmatpush3.bf16.xpose.msra.mxu1 %v361_v1 }
   0xc   :  { %313 = vmatprep.subr.bf16.mxu0 %v362_v2  ;;  %343 = vmatprep.subr.bf16.mxu1 %v362_v2 }
   0xd   :  { %7 = vsyncpa [#allocation3], 0  ;;  %v364_v6 = vld [vmem:[%s479_s1 + $0x20] sm:$0xff]   ;;  %v365_v7 = vld [vmem:[%s479_s1 + $0x28] sm:$0xff]   ;;  %s400_s12 = smov [#allocation2]  }
   0xe   :  { %v366_v8 = vld [vmem:[%s479_s1 + $0x30] sm:$0xff]   ;;  %v367_v9 = vld [vmem:[%s479_s1 + $0x38] sm:$0xff]   ;;  %v370_v10 = vld [vmem:[%s478_s0 + $0x8] sm:$0xff]  }
   0xf   :  { %v371_v11 = vld [vmem:[%s478_s0 + $0x28] sm:$0xff]   ;;  %v372_v12 = vld [vmem:[%s478_s0 + $0x10] sm:$0xff]   ;;  %v374_v14 = vld [vmem:[%s478_s0 + $0x18] sm:$0xff]  }
  0x10   :  { %v373_v13 = vld [vmem:[%s478_s0 + $0x30] sm:$0xff]   ;;  %v375_v15 = vld [vmem:[%s478_s0 + $0x38] sm:$0xff]   ;;  %s264_s0 = sshll.u32 %s400_s12, 4  ;;  %s265_s0 = int_to_ptr.vmem [resolvable:$true] %s264_s0 }
  0x11   :  { %s376_s13 = scalar_lea.vmem %s265_s0, 2048  ;;  %p381_p1 = scmp.lt.s32.totalorder %s265_s0, %s265_s0 }
  0x12   :  { %p377_p0 = scmp.ne.s32.totalorder %s265_s0, %s376_s13  ;;  %p382_p2 = scmp.lt.s32.totalorder %s376_s13, %s376_s13 }
  0x13   :  { %314 = vmatpush3.bf16.xpose.msra.mxu0 %v362_v2  ;;  %351 = vmatpush3.bf16.xpose.msra.mxu1 %v362_v2 }
  0x14   :  { %315 = vmatprep.subr.bf16.mxu0 %v363_v5  ;;  %344 = vmatprep.subr.bf16.mxu1 %v363_v5  ;;  %p383_p3 = por %p382_p2, %p381_p1 }
  0x16   :  { %p384_p4 = pnand %p383_p3, %p377_p0 }
  0x1b   :  { %316 = vmatpush3.bf16.xpose.msra.mxu0 %v363_v5  ;;  %352 = vmatpush3.bf16.xpose.msra.mxu1 %v363_v5 }
  0x1c   :  { %317 = vmatprep.subr.bf16.mxu0 %v364_v6  ;;  %345 = vmatprep.subr.bf16.mxu1 %v364_v6 }
  0x23   :  { %318 = vmatpush3.bf16.xpose.msra.mxu0 %v364_v6  ;;  %353 = vmatpush3.bf16.xpose.msra.mxu1 %v364_v6 }
  0x24   :  { %319 = vmatprep.subr.bf16.mxu0 %v365_v7  ;;  %346 = vmatprep.subr.bf16.mxu1 %v365_v7 }
  0x2b   :  { %320 = vmatpush3.bf16.xpose.msra.mxu0 %v365_v7  ;;  %354 = vmatpush3.bf16.xpose.msra.mxu1 %v365_v7 }
  0x2c   :  { %321 = vmatprep.subr.bf16.mxu0 %v366_v8  ;;  %347 = vmatprep.subr.bf16.mxu1 %v366_v8 }
  0x33   :  { %322 = vmatpush3.bf16.xpose.msra.mxu0 %v366_v8  ;;  %355 = vmatpush3.bf16.xpose.msra.mxu1 %v366_v8 }
  0x34   :  { %323 = vmatprep.subr.bf16.mxu0 %v367_v9  ;;  %348 = vmatprep.subr.bf16.mxu1 %v367_v9 }
  0x3b   :  { %324 = vmatpush3.bf16.xpose.msra.mxu0 %v367_v9  ;;  %356 = vmatpush3.bf16.xpose.msra.mxu1 %v367_v9 }
  0x42   :  { %326 = vmatmul.mubr.bf16.vlgmr.msra.gmra.mrb[0].mxu0 %v370_v10  ;;  %334 = vmatmul.mubr.bf16.vlgmr.msra.gmra.mrb[0].mxu1 %v371_v11 }
  0x43   :  { %329 = vmatprep.mubr.bf16.mxu0 %v372_v12  ;;  %337 = vmatprep.mubr.bf16.mxu1 %v373_v13 }
  0x4a   :  { %330 = vmatmul.mubr.bf16.gmra.mrb[4].mxu0 %v374_v14  ;;  %338 = vmatmul.mubr.bf16.gmra.mrb[4].mxu1 %v375_v15 }
 0x115   :  { %v327_v16 = vpop.f32.mrb[0].mxu0  ;;  %v335_v17 = vpop.f32.mrb[0].mxu1 }
 0x116   :  { %245 = vst [vmem:[#allocation2 + $0x10] sm:$0xff] %v327_v16  ;;  %253 = vst [vmem:[#allocation2 + $0x50] sm:$0xff] %v335_v17  ;;  %v180_v18 = vpop.f32.mrb[1].mxu0  ;;  %v212_v19 = vpop.f32.mrb[1].mxu1 }
 0x117   :  { %243 = vst [vmem:[#allocation2] sm:$0xff] %v180_v18  ;;  %251 = vst [vmem:[#allocation2 + $0x40] sm:$0xff] %v212_v19  ;;  %v328_v20 = vpop.f32.mrb[2].mxu0  ;;  %v336_v21 = vpop.f32.mrb[2].mxu1 }
 0x118   :  { %246 = vst [vmem:[#allocation2 + $0x18] sm:$0xff] %v328_v20  ;;  %254 = vst [vmem:[#allocation2 + $0x58] sm:$0xff] %v336_v21  ;;  %v183_v22 = vpop.f32.mrb[3].mxu0  ;;  %v215_v23 = vpop.f32.mrb[3].mxu1 }
 0x119   :  { %244 = vst [vmem:[#allocation2 + $0x8] sm:$0xff] %v183_v22  ;;  %252 = vst [vmem:[#allocation2 + $0x48] sm:$0xff] %v215_v23 }
 0x11d   :  { %v331_v24 = vpop.f32.mrb[4].mxu0  ;;  %v339_v25 = vpop.f32.mrb[4].mxu1 }
 0x11e   :  { %249 = vst [vmem:[#allocation2 + $0x30] sm:$0xff] %v331_v24  ;;  %257 = vst [vmem:[#allocation2 + $0x70] sm:$0xff] %v339_v25  ;;  %v196_v26 = vpop.f32.mrb[5].mxu0  ;;  %v228_v27 = vpop.f32.mrb[5].mxu1 }
 0x11f   :  { %247 = vst [vmem:[#allocation2 + $0x20] sm:$0xff] %v196_v26  ;;  %255 = vst [vmem:[#allocation2 + $0x60] sm:$0xff] %v228_v27  ;;  %v332_v28 = vpop.f32.mrb[6].mxu0  ;;  %v340_v29 = vpop.f32.mrb[6].mxu1 }
 0x120   :  { %250 = vst [vmem:[#allocation2 + $0x38] sm:$0xff] %v332_v28  ;;  %258 = vst [vmem:[#allocation2 + $0x78] sm:$0xff] %v340_v29  ;;  %v199_v30 = vpop.f32.mrb[7].mxu0  ;;  %v231_v31 = vpop.f32.mrb[7].mxu1 }
 0x121   :  { %248 = vst [vmem:[#allocation2 + $0x28] sm:$0xff] %v199_v30  ;;  %256 = vst [vmem:[#allocation2 + $0x68] sm:$0xff] %v231_v31 }
 0x122   :  { %387 = shalt.err (!%p384_p4)
}
 0x123   :  { %s388_s16 = scalar_lea.hbm %s480_s2, 2048 }
 0x124   :  { %p389_p5 = scmp.ne.s32.totalorder %s480_s2, %s388_s16  ;;  %p392_p6 = scmp.lt.u32.totalorder %s388_s16, %s480_s2 }
 0x126   :  { %p394_p7 = pnand %p392_p6, %p389_p5 }
 0x128   :  { %397 = shalt.err (!%p394_p7)
}
 0x129   :  { %s401_s21 = smov 128   ;;  %s402_s22 = smov 8  }
 0x12a   :  { %270 = dma.vmem_to_hbm [thread:$0]  %s265_s0, 2048, %s480_s2, [#allocation3], %s401_s21, %s401_s21, %s402_s22  }
 0x12b   :  { %398 = dma.done.wait [#allocation3], 2048  }
 0x12c   :  { %399 = vsyncadd [#allocation3], 4294965248 }
 0x12d   :  { %274 = vsyncpa [#allocation3], 1 }

// kernel: _gcnae_forward_padded.3
= control target key start
LH: loop header
LB: loop body
LE: loop exit
PB: predicated region body
PF: predicated region fallthrough
CT: control target
= control target key end

     0   :  { %9 = vsyncpa [#allocation4], 0  ;;  %s1041_s0 = inlined_call_operand.hbm [shape: bf16[128,128], index: 0, kind: input, shape index: {}]   ;;  %s1042_s1 = inlined_call_operand.hbm [shape: bf16[128,128], index: 1, kind: input, shape index: {}]   ;;  %s1043_s2 = inlined_call_operand.hbm [shape: bf16[128,128], index: 2, kind: input, shape index: {}]   ;;  %s1044_s3 = inlined_call_operand.vmem [shape: f32[1,128], index: 3, kind: input, shape index: {}]   ;;  %s1045_s4 = inlined_call_operand.vmem [shape: bf16[128,128], index: 4, kind: output, shape index: {}]  }
   0x1   :  { %10 = vsyncpa [#allocation6], 0  ;;  %s932_s15 = smov [#allocation5]   ;;  %s933_s17 = smov [#allocation3]  }
   0x2   :  { %s28_s16 = sshll.u32 %s932_s15, 4  ;;  %s16_s18 = sshll.u32 %s933_s17, 4  ;;  %s29_s16 = int_to_ptr.vmem [resolvable:$true] %s28_s16  ;;  %s962_s18 = int_to_ptr.vmem [resolvable:$true] %s16_s18 }
   0x3   :  { %s862_s21 = scalar_lea.hbm %s1042_s1, 1024 }
   0x4   :  { %p863_p0 = scmp.ne.s32.totalorder %s1042_s1, %s862_s21  ;;  %p866_p1 = scmp.lt.u32.totalorder %s862_s21, %s1042_s1 }
   0x6   :  { %p868_p2 = pnand %p866_p1, %p863_p0 }
   0x8   :  { %871 = shalt.err (!%p868_p2)
}
   0x9   :  { %s872_s26 = scalar_lea.vmem %s29_s16, 1024  ;;  %p877_p4 = scmp.lt.s32.totalorder %s29_s16, %s29_s16 }
   0xa   :  { %p873_p3 = scmp.ne.s32.totalorder %s29_s16, %s872_s26  ;;  %p878_p5 = scmp.lt.s32.totalorder %s872_s26, %s872_s26 }
   0xc   :  { %p879_p6 = por %p878_p5, %p877_p4 }
   0xe   :  { %p880_p7 = pnand %p879_p6, %p873_p3 }
  0x10   :  { %883 = shalt.err (!%p880_p7)
}
  0x11   :  { %s934_s27 = smov 64   ;;  %s935_s28 = smov 4  }
  0x12   :  { %34 = dma.hbm_to_vmem [thread:$0]  %s1042_s1, 1024, %s29_s16, [#allocation6], %s934_s27, %s934_s27, %s935_s28  }
  0x13   :  { %s884_s7 = scalar_lea.hbm %s1041_s0, 1024 }
  0x14   :  { %p885_p8 = scmp.ne.s32.totalorder %s1041_s0, %s884_s7  ;;  %p888_p9 = scmp.lt.u32.totalorder %s884_s7, %s1041_s0 }
  0x16   :  { %p890_p10 = pnand %p888_p9, %p885_p8 }
  0x18   :  { %893 = shalt.err (!%p890_p10)
}
  0x19   :  { %s894_s12 = scalar_lea.vmem %s962_s18, 1024  ;;  %p899_p12 = scmp.lt.s32.totalorder %s962_s18, %s962_s18 }
  0x1a   :  { %p895_p11 = scmp.ne.s32.totalorder %s962_s18, %s894_s12  ;;  %p900_p13 = scmp.lt.s32.totalorder %s894_s12, %s894_s12 }
  0x1c   :  { %p901_p0 = por %p900_p13, %p899_p12 }
  0x1e   :  { %p902_p1 = pnand %p901_p0, %p895_p11 }
  0x20   :  { %905 = shalt.err (!%p902_p1)
}
  0x21   :  { %22 = dma.hbm_to_vmem [thread:$0]  %s1041_s0, 1024, %s962_s18, [#allocation4], %s934_s27, %s934_s27, %s935_s28  }
  0x22   :  { %s936_s14 = smov [#allocation7]   ;;  %s906_s19 = scalar_lea.hbm %s1043_s2, 1024 }
  0x23   :  { %s40_s15 = sshll.u32 %s936_s14, 4  ;;  %p907_p2 = scmp.ne.s32.totalorder %s1043_s2, %s906_s19  ;;  %s41_s15 = int_to_ptr.vmem [resolvable:$true] %s40_s15 }
  0x24   :  { %p910_p3 = scmp.lt.u32.totalorder %s906_s19, %s1043_s2 }
  0x26   :  { %p912_p4 = pnand %p910_p3, %p907_p2 }
  0x28   :  { %915 = shalt.err (!%p912_p4)
}
  0x29   :  { %s916_s24 = scalar_lea.vmem %s41_s15, 1024  ;;  %p921_p6 = scmp.lt.s32.totalorder %s41_s15, %s41_s15 }
  0x2a   :  { %p917_p5 = scmp.ne.s32.totalorder %s41_s15, %s916_s24  ;;  %p922_p7 = scmp.lt.s32.totalorder %s916_s24, %s916_s24 }
  0x2c   :  { %p923_p8 = por %p922_p7, %p921_p6 }
  0x2e   :  { %p924_p9 = pnand %p923_p8, %p917_p5 }
  0x30   :  { %927 = shalt.err (!%p924_p9)
}
  0x31   :  { %46 = dma.hbm_to_vmem [thread:$0]  %s1043_s2, 1024, %s41_s15, [#allocation6], %s934_s27, %s934_s27, %s935_s28  }
  0x32   :  { %928 = dma.done.wait [#allocation4], 1024  }
  0x33   :  { %929 = vsyncadd [#allocation4], 4294966272 }
  0x34   :  { %930 = dma.done.wait [#allocation6], 2048  }
  0x35   :  { %931 = vsyncadd [#allocation6], 4294965248  ;;  %v838_v0 = vld [vmem:[#allocation5] sm:$0xff]   ;;  %v839_v1 = vld [vmem:[#allocation5 + $0x8] sm:$0xff]  }
  0x36   :  { %769 = vmatprep.subr.bf16.mxu0 %v838_v0  ;;  %v840_v2 = vld [vmem:[#allocation5 + $0x10] sm:$0xff]   ;;  %v841_v3 = vld [vmem:[#allocation5 + $0x18] sm:$0xff]   ;;  %v846_v4 = vld [vmem:[#allocation3] sm:$0xff]  }
  0x37   :  { %770 = vmatpush3.bf16.msra.mxu0 %v838_v0  ;;  %785 = vmatprep.mubr.bf16.mxu0 %v846_v4  ;;  %v842_v5 = vld [vmem:[#allocation5 + $0x20] sm:$0xff]   ;;  %v843_v6 = vld [vmem:[#allocation5 + $0x28] sm:$0xff]   ;;  %v844_v9 = vld [vmem:[#allocation5 + $0x30] sm:$0xff]  }
  0x38   :  { %771 = vmatprep.subr.bf16.mxu0 %v839_v1  ;;  %v854_v7 = vld [vmem:[#allocation7] sm:$0xff]   ;;  %v855_v8 = vld [vmem:[#allocation7 + $0x8] sm:$0xff]   ;;  %v856_v10 = vld [vmem:[#allocation7 + $0x10] sm:$0xff]  }
  0x39   :  { %801 = vmatprep.subr.bf16.mxu1 %v854_v7  ;;  %v845_v11 = vld [vmem:[#allocation5 + $0x38] sm:$0xff]   ;;  %v858_v13 = vld [vmem:[#allocation7 + $0x20] sm:$0xff]   ;;  %v847_v14 = vld [vmem:[#allocation3 + $0x8] sm:$0xff]  }
  0x3a   :  { %802 = vmatpush3.bf16.msra.mxu1 %v854_v7  ;;  %v857_v12 = vld [vmem:[#allocation7 + $0x18] sm:$0xff]   ;;  %v848_v15 = vld [vmem:[#allocation3 + $0x10] sm:$0xff]   ;;  %v859_v16 = vld [vmem:[#allocation7 + $0x28] sm:$0xff]  }
  0x3b   :  { %772 = vmatpush3.bf16.msra.mxu0 %v839_v1  ;;  %803 = vmatprep.subr.bf16.mxu1 %v855_v8  ;;  %v860_v17 = vld [vmem:[#allocation7 + $0x30] sm:$0xff]   ;;  %v849_v18 = vld [vmem:[#allocation3 + $0x18] sm:$0xff]   ;;  %v850_v19 = vld [vmem:[#allocation3 + $0x20] sm:$0xff]  }
  0x3c   :  { %773 = vmatprep.subr.bf16.mxu0 %v840_v2  ;;  %v851_v20 = vld [vmem:[#allocation3 + $0x28] sm:$0xff]   ;;  %v852_v21 = vld [vmem:[#allocation3 + $0x30] sm:$0xff]   ;;  %v853_v22 = vld [vmem:[#allocation3 + $0x38] sm:$0xff]  }
  0x3d   :  { %v861_v23 = vld [vmem:[#allocation7 + $0x38] sm:$0xff]   ;;  %v649_v49 = vld [vmem:[%s1044_s3] ss:$0 sm:$0xff] }
  0x3e   :  { %804 = vmatpush3.bf16.msra.mxu1 %v855_v8 }
  0x3f   :  { %774 = vmatpush3.bf16.msra.mxu0 %v840_v2  ;;  %805 = vmatprep.subr.bf16.mxu1 %v856_v10 }
  0x40   :  { %775 = vmatprep.subr.bf16.mxu0 %v841_v3 }
  0x42   :  { %806 = vmatpush3.bf16.msra.mxu1 %v856_v10 }
  0x43   :  { %776 = vmatpush3.bf16.msra.mxu0 %v841_v3  ;;  %807 = vmatprep.subr.bf16.mxu1 %v857_v12 }
  0x44   :  { %777 = vmatprep.subr.bf16.mxu0 %v842_v5 }
  0x46   :  { %808 = vmatpush3.bf16.msra.mxu1 %v857_v12 }
  0x47   :  { %778 = vmatpush3.bf16.msra.mxu0 %v842_v5  ;;  %809 = vmatprep.subr.bf16.mxu1 %v858_v13 }
  0x48   :  { %779 = vmatprep.subr.bf16.mxu0 %v843_v6 }
  0x4a   :  { %810 = vmatpush3.bf16.msra.mxu1 %v858_v13 }
  0x4b   :  { %780 = vmatpush3.bf16.msra.mxu0 %v843_v6  ;;  %811 = vmatprep.subr.bf16.mxu1 %v859_v16 }
  0x4c   :  { %781 = vmatprep.subr.bf16.mxu0 %v844_v9 }
  0x4e   :  { %812 = vmatpush3.bf16.msra.mxu1 %v859_v16 }
  0x4f   :  { %782 = vmatpush3.bf16.msra.mxu0 %v844_v9  ;;  %813 = vmatprep.subr.bf16.mxu1 %v860_v17 }
  0x50   :  { %783 = vmatprep.subr.bf16.mxu0 %v845_v11 }
  0x52   :  { %814 = vmatpush3.bf16.msra.mxu1 %v860_v17 }
  0x53   :  { %784 = vmatpush3.bf16.msra.mxu0 %v845_v11  ;;  %815 = vmatprep.subr.bf16.mxu1 %v861_v23 }
  0x56   :  { %786 = vmatmul.mubr.bf16.vlgmr.msra.gmra.mrb[0].mxu0 %v847_v14  ;;  %816 = vmatpush3.bf16.msra.mxu1 %v861_v23 }
  0x57   :  { %789 = vmatprep.mubr.bf16.mxu0 %v848_v15 }
  0x5e   :  { %790 = vmatmul.mubr.bf16.gmra.mrb[4].mxu0 %v849_v18 }
  0x5f   :  { %793 = vmatprep.mubr.bf16.mxu0 %v850_v19 }
  0x66   :  { %794 = vmatmul.mubr.bf16.gmra.mrb[8].mxu0 %v851_v20 }
  0x67   :  { %797 = vmatprep.mubr.bf16.mxu0 %v852_v21 }
  0x6e   :  { %798 = vmatmul.mubr.bf16.gmra.mrb[12].mxu0 %v853_v22 }
 0x129   :  { %v787_v24 = vpop.f32.mrb[0].mxu0 }
 0x12a   :  { %v257_v25 = vpop.f32.mrb[1].mxu0 }
 0x12b   :  { %v788_v26 = vpop.f32.mrb[2].mxu0 }
 0x12c   :  { %v372_v27 = vpack.c.bf16 %v788_v26, %v787_v24  ;;  %v260_v28 = vpop.f32.mrb[3].mxu0 }
 0x12d   :  { %v371_v29 = vpack.c.bf16 %v260_v28, %v257_v25 }
 0x12f   :  { %817 = vmatprep.mubr.bf16.mxu1 %v371_v29 }
 0x130   :  { %818 = vmatmul.mubr.bf16.vlgmr.msra.gmra.mrb[0].mxu1 %v372_v27 }
 0x131   :  { %v791_v30 = vpop.f32.mrb[4].mxu0 }
 0x132   :  { %v273_v31 = vpop.f32.mrb[5].mxu0 }
 0x133   :  { %v792_v32 = vpop.f32.mrb[6].mxu0 }
 0x134   :  { %v374_v33 = vpack.c.bf16 %v792_v32, %v791_v30  ;;  %v276_v34 = vpop.f32.mrb[7].mxu0 }
 0x135   :  { %v373_v35 = vpack.c.bf16 %v276_v34, %v273_v31 }
 0x137   :  { %821 = vmatprep.mubr.bf16.mxu1 %v373_v35 }
 0x138   :  { %822 = vmatmul.mubr.bf16.gmra.mrb[4].mxu1 %v374_v33 }
 0x139   :  { %v795_v36 = vpop.f32.mrb[8].mxu0 }
 0x13a   :  { %v289_v37 = vpop.f32.mrb[9].mxu0 }
 0x13b   :  { %v796_v38 = vpop.f32.mrb[10].mxu0 }
 0x13c   :  { %v376_v39 = vpack.c.bf16 %v796_v38, %v795_v36  ;;  %v292_v40 = vpop.f32.mrb[11].mxu0 }
 0x13d   :  { %v375_v41 = vpack.c.bf16 %v292_v40, %v289_v37 }
 0x13f   :  { %825 = vmatprep.mubr.bf16.mxu1 %v375_v41 }
 0x140   :  { %826 = vmatmul.mubr.bf16.gmra.mrb[8].mxu1 %v376_v39 }
 0x141   :  { %v799_v42 = vpop.f32.mrb[12].mxu0 }
 0x142   :  { %v305_v43 = vpop.f32.mrb[13].mxu0 }
 0x143   :  { %v800_v44 = vpop.f32.mrb[14].mxu0 }
 0x144   :  { %v378_v45 = vpack.c.bf16 %v800_v44, %v799_v42  ;;  %v308_v46 = vpop.f32.mrb[15].mxu0 }
 0x145   :  { %v377_v47 = vpack.c.bf16 %v308_v46, %v305_v43 }
 0x147   :  { %829 = vmatprep.mubr.bf16.mxu1 %v377_v47 }
 0x148   :  { %830 = vmatmul.mubr.bf16.gmra.mrb[12].mxu1 %v378_v45 }
 0x203   :  { %v819_v48 = vpop.f32.mrb[0].mxu1 }
 0x204   :  { %v484_v50 = vpop.f32.mrb[1].mxu1  ;;  %v493_v52 = vadd.f32 %v819_v48, %v649_v49 }
 0x205   :  { %v820_v51 = vpop.f32.mrb[2].mxu1  ;;  %v485_v55 = vadd.f32 %v649_v49, %v484_v50 }
 0x206   :  { %v496_v53 = vadd.f32 %v820_v51, %v649_v49  ;;  %v487_v54 = vpop.f32.mrb[3].mxu1 }
 0x207   :  { %v488_v56 = vadd.f32 %v649_v49, %v487_v54 }
 0x208   :  { %v698_v57 = vpack.c.bf16 %v496_v53, %v493_v52 }
 0x209   :  { %v693_v58 = vpack.c.bf16 %v488_v56, %v485_v55 }
 0x20a   :  { %730 = vst [vmem:[%s1045_s4 + $0x8] sm:$0xff] %v698_v57  }
 0x20b   :  { %694 = vst [vmem:[%s1045_s4] sm:$0xff] %v693_v58   ;;  %v823_v59 = vpop.f32.mrb[4].mxu1 }
 0x20c   :  { %v500_v60 = vpop.f32.mrb[5].mxu1  ;;  %v509_v62 = vadd.f32 %v823_v59, %v649_v49 }
 0x20d   :  { %v824_v61 = vpop.f32.mrb[6].mxu1  ;;  %v501_v1 = vadd.f32 %v649_v49, %v500_v60 }
 0x20e   :  { %v512_v63 = vadd.f32 %v824_v61, %v649_v49  ;;  %v503_v0 = vpop.f32.mrb[7].mxu1 }
 0x20f   :  { %v504_v2 = vadd.f32 %v649_v49, %v503_v0 }
 0x210   :  { %v708_v3 = vpack.c.bf16 %v512_v63, %v509_v62 }
 0x211   :  { %v703_v4 = vpack.c.bf16 %v504_v2, %v501_v1 }
 0x212   :  { %732 = vst [vmem:[%s1045_s4 + $0x18] sm:$0xff] %v708_v3  }
 0x213   :  { %731 = vst [vmem:[%s1045_s4 + $0x10] sm:$0xff] %v703_v4   ;;  %v827_v5 = vpop.f32.mrb[8].mxu1 }
 0x214   :  { %v516_v6 = vpop.f32.mrb[9].mxu1  ;;  %v525_v8 = vadd.f32 %v827_v5, %v649_v49 }
 0x215   :  { %v828_v7 = vpop.f32.mrb[10].mxu1  ;;  %v517_v11 = vadd.f32 %v649_v49, %v516_v6 }
 0x216   :  { %v528_v9 = vadd.f32 %v828_v7, %v649_v49  ;;  %v519_v10 = vpop.f32.mrb[11].mxu1 }
 0x217   :  { %v520_v12 = vadd.f32 %v649_v49, %v519_v10 }
 0x218   :  { %v718_v13 = vpack.c.bf16 %v528_v9, %v525_v8 }
 0x219   :  { %v713_v14 = vpack.c.bf16 %v520_v12, %v517_v11 }
 0x21a   :  { %734 = vst [vmem:[%s1045_s4 + $0x28] sm:$0xff] %v718_v13  }
 0x21b   :  { %733 = vst [vmem:[%s1045_s4 + $0x20] sm:$0xff] %v713_v14   ;;  %v831_v15 = vpop.f32.mrb[12].mxu1 }
 0x21c   :  { %v532_v16 = vpop.f32.mrb[13].mxu1  ;;  %v541_v18 = vadd.f32 %v831_v15, %v649_v49 }
 0x21d   :  { %v832_v17 = vpop.f32.mrb[14].mxu1  ;;  %v533_v21 = vadd.f32 %v649_v49, %v532_v16 }
 0x21e   :  { %v544_v19 = vadd.f32 %v832_v17, %v649_v49  ;;  %v535_v20 = vpop.f32.mrb[15].mxu1 }
 0x21f   :  { %v536_v22 = vadd.f32 %v649_v49, %v535_v20 }
 0x220   :  { %v728_v23 = vpack.c.bf16 %v544_v19, %v541_v18 }
 0x221   :  { %v723_v24 = vpack.c.bf16 %v536_v22, %v533_v21 }
 0x222   :  { %736 = vst [vmem:[%s1045_s4 + $0x38] sm:$0xff] %v728_v23  }
 0x223   :  { %735 = vst [vmem:[%s1045_s4 + $0x30] sm:$0xff] %v723_v24  }
 0x224   :  { %631 = vsyncpa [#allocation4], 1 }
 0x225   :  { %632 = vsyncpa [#allocation6], 1 }

// kernel: _gcnae_forward_padded.4
= control target key start
LH: loop header
LB: loop body
LE: loop exit
PB: predicated region body
PF: predicated region fallthrough
CT: control target
= control target key end

     0   :  { %s819_s1 = inlined_call_operand.vmem [shape: bf16[128,128], index: 1, kind: input, shape index: {}]   ;;  %s820_s0 = inlined_call_operand.vmem [shape: bf16[128,128], index: 0, kind: input, shape index: {}]   ;;  %s821_s2 = inlined_call_operand.vmem [shape: bf16[128,128], index: 2, kind: input, shape index: {}]   ;;  %s822_s3 = inlined_call_operand.vmem [shape: f32[1,128], index: 3, kind: input, shape index: {}]   ;;  %s823_s4 = inlined_call_operand.vmem [shape: f32[128,128], index: 4, kind: output, shape index: {}]  }
   0x1   :  { %v647_v0 = vld [vmem:[%s819_s1] sm:$0xff]   ;;  %v648_v1 = vld [vmem:[%s819_s1 + $0x8] sm:$0xff]   ;;  %v649_v2 = vld [vmem:[%s819_s1 + $0x10] sm:$0xff]  }
   0x2   :  { %583 = vmatprep.subr.bf16.mxu0 %v647_v0  ;;  %v650_v3 = vld [vmem:[%s819_s1 + $0x18] sm:$0xff]   ;;  %v655_v4 = vld [vmem:[%s820_s0] sm:$0xff]   ;;  %v652_v6 = vld [vmem:[%s819_s1 + $0x28] sm:$0xff]  }
   0x3   :  { %584 = vmatpush3.bf16.msra.mxu0 %v647_v0  ;;  %599 = vmatprep.mubr.bf16.mxu0 %v655_v4  ;;  %v651_v5 = vld [vmem:[%s819_s1 + $0x20] sm:$0xff]   ;;  %v664_v8 = vld [vmem:[%s821_s2 + $0x8] sm:$0xff]   ;;  %v653_v9 = vld [vmem:[%s819_s1 + $0x30] sm:$0xff]  }
   0x4   :  { %585 = vmatprep.subr.bf16.mxu0 %v648_v1  ;;  %v663_v7 = vld [vmem:[%s821_s2] sm:$0xff]   ;;  %v665_v10 = vld [vmem:[%s821_s2 + $0x10] sm:$0xff]   ;;  %v654_v11 = vld [vmem:[%s819_s1 + $0x38] sm:$0xff]  }
   0x5   :  { %615 = vmatprep.subr.bf16.mxu1 %v663_v7  ;;  %v666_v12 = vld [vmem:[%s821_s2 + $0x18] sm:$0xff]   ;;  %v667_v13 = vld [vmem:[%s821_s2 + $0x20] sm:$0xff]   ;;  %v656_v14 = vld [vmem:[%s820_s0 + $0x8] sm:$0xff]  }
   0x6   :  { %616 = vmatpush3.bf16.msra.mxu1 %v663_v7  ;;  %v657_v15 = vld [vmem:[%s820_s0 + $0x10] sm:$0xff]   ;;  %v668_v16 = vld [vmem:[%s821_s2 + $0x28] sm:$0xff]   ;;  %v658_v18 = vld [vmem:[%s820_s0 + $0x18] sm:$0xff]  }
   0x7   :  { %586 = vmatpush3.bf16.msra.mxu0 %v648_v1  ;;  %617 = vmatprep.subr.bf16.mxu1 %v664_v8  ;;  %v669_v17 = vld [vmem:[%s821_s2 + $0x30] sm:$0xff]   ;;  %v659_v19 = vld [vmem:[%s820_s0 + $0x20] sm:$0xff]   ;;  %v660_v20 = vld [vmem:[%s820_s0 + $0x28] sm:$0xff]  }
   0x8   :  { %587 = vmatprep.subr.bf16.mxu0 %v649_v2  ;;  %v661_v21 = vld [vmem:[%s820_s0 + $0x30] sm:$0xff]   ;;  %v662_v22 = vld [vmem:[%s820_s0 + $0x38] sm:$0xff]   ;;  %v542_v48 = vld [vmem:[%s822_s3] ss:$0 sm:$0xff] }
   0x9   :  { %v670_v23 = vld [vmem:[%s821_s2 + $0x38] sm:$0xff]  }
   0xa   :  { %618 = vmatpush3.bf16.msra.mxu1 %v664_v8 }
   0xb   :  { %588 = vmatpush3.bf16.msra.mxu0 %v649_v2  ;;  %619 = vmatprep.subr.bf16.mxu1 %v665_v10 }
   0xc   :  { %589 = vmatprep.subr.bf16.mxu0 %v650_v3 }
   0xe   :  { %620 = vmatpush3.bf16.msra.mxu1 %v665_v10 }
   0xf   :  { %590 = vmatpush3.bf16.msra.mxu0 %v650_v3  ;;  %621 = vmatprep.subr.bf16.mxu1 %v666_v12 }
  0x10   :  { %591 = vmatprep.subr.bf16.mxu0 %v651_v5 }
  0x12   :  { %622 = vmatpush3.bf16.msra.mxu1 %v666_v12 }
  0x13   :  { %592 = vmatpush3.bf16.msra.mxu0 %v651_v5  ;;  %623 = vmatprep.subr.bf16.mxu1 %v667_v13 }
  0x14   :  { %593 = vmatprep.subr.bf16.mxu0 %v652_v6 }
  0x16   :  { %624 = vmatpush3.bf16.msra.mxu1 %v667_v13 }
  0x17   :  { %594 = vmatpush3.bf16.msra.mxu0 %v652_v6  ;;  %625 = vmatprep.subr.bf16.mxu1 %v668_v16 }
  0x18   :  { %595 = vmatprep.subr.bf16.mxu0 %v653_v9 }
  0x1a   :  { %626 = vmatpush3.bf16.msra.mxu1 %v668_v16 }
  0x1b   :  { %596 = vmatpush3.bf16.msra.mxu0 %v653_v9  ;;  %627 = vmatprep.subr.bf16.mxu1 %v669_v17 }
  0x1c   :  { %597 = vmatprep.subr.bf16.mxu0 %v654_v11 }
  0x1e   :  { %628 = vmatpush3.bf16.msra.mxu1 %v669_v17 }
  0x1f   :  { %598 = vmatpush3.bf16.msra.mxu0 %v654_v11  ;;  %629 = vmatprep.subr.bf16.mxu1 %v670_v23 }
  0x22   :  { %600 = vmatmul.mubr.bf16.vlgmr.msra.gmra.mrb[0].mxu0 %v656_v14  ;;  %630 = vmatpush3.bf16.msra.mxu1 %v670_v23 }
  0x23   :  { %603 = vmatprep.mubr.bf16.mxu0 %v657_v15 }
  0x2a   :  { %604 = vmatmul.mubr.bf16.gmra.mrb[4].mxu0 %v658_v18 }
  0x2b   :  { %607 = vmatprep.mubr.bf16.mxu0 %v659_v19 }
  0x32   :  { %608 = vmatmul.mubr.bf16.gmra.mrb[8].mxu0 %v660_v20 }
  0x33   :  { %611 = vmatprep.mubr.bf16.mxu0 %v661_v21 }
  0x3a   :  { %612 = vmatmul.mubr.bf16.gmra.mrb[12].mxu0 %v662_v22 }
  0xf5   :  { %v601_v24 = vpop.f32.mrb[0].mxu0 }
  0xf6   :  { %v216_v25 = vpop.f32.mrb[1].mxu0 }
  0xf7   :  { %v602_v26 = vpop.f32.mrb[2].mxu0 }
  0xf8   :  { %v331_v27 = vpack.c.bf16 %v602_v26, %v601_v24  ;;  %v219_v28 = vpop.f32.mrb[3].mxu0 }
  0xf9   :  { %v330_v29 = vpack.c.bf16 %v219_v28, %v216_v25 }
  0xfb   :  { %631 = vmatprep.mubr.bf16.mxu1 %v330_v29 }
  0xfc   :  { %632 = vmatmul.mubr.bf16.vlgmr.msra.gmra.mrb[0].mxu1 %v331_v27 }
  0xfd   :  { %v605_v30 = vpop.f32.mrb[4].mxu0 }
  0xfe   :  { %v232_v31 = vpop.f32.mrb[5].mxu0 }
  0xff   :  { %v606_v32 = vpop.f32.mrb[6].mxu0 }
 0x100   :  { %v333_v33 = vpack.c.bf16 %v606_v32, %v605_v30  ;;  %v235_v34 = vpop.f32.mrb[7].mxu0 }
 0x101   :  { %v332_v35 = vpack.c.bf16 %v235_v34, %v232_v31 }
 0x103   :  { %635 = vmatprep.mubr.bf16.mxu1 %v332_v35 }
 0x104   :  { %636 = vmatmul.mubr.bf16.gmra.mrb[4].mxu1 %v333_v33 }
 0x105   :  { %v609_v36 = vpop.f32.mrb[8].mxu0 }
 0x106   :  { %v248_v37 = vpop.f32.mrb[9].mxu0 }
 0x107   :  { %v610_v38 = vpop.f32.mrb[10].mxu0 }
 0x108   :  { %v335_v39 = vpack.c.bf16 %v610_v38, %v609_v36  ;;  %v251_v40 = vpop.f32.mrb[11].mxu0 }
 0x109   :  { %v334_v41 = vpack.c.bf16 %v251_v40, %v248_v37 }
 0x10b   :  { %639 = vmatprep.mubr.bf16.mxu1 %v334_v41 }
 0x10c   :  { %640 = vmatmul.mubr.bf16.gmra.mrb[8].mxu1 %v335_v39 }
 0x10d   :  { %v613_v42 = vpop.f32.mrb[12].mxu0 }
 0x10e   :  { %v264_v43 = vpop.f32.mrb[13].mxu0 }
 0x10f   :  { %v614_v44 = vpop.f32.mrb[14].mxu0 }
 0x110   :  { %v337_v45 = vpack.c.bf16 %v614_v44, %v613_v42  ;;  %v267_v46 = vpop.f32.mrb[15].mxu0 }
 0x111   :  { %v336_v47 = vpack.c.bf16 %v267_v46, %v264_v43 }
 0x113   :  { %643 = vmatprep.mubr.bf16.mxu1 %v336_v47 }
 0x114   :  { %644 = vmatmul.mubr.bf16.gmra.mrb[12].mxu1 %v337_v45 }
 0x1cf   :  { %v633_v49 = vpop.f32.mrb[0].mxu1 }
 0x1d0   :  { %v452_v50 = vadd.f32 %v633_v49, %v542_v48  ;;  %v443_v51 = vpop.f32.mrb[1].mxu1 }
 0x1d1   :  { %v444_v52 = vadd.f32 %v542_v48, %v443_v51  ;;  %v634_v53 = vpop.f32.mrb[2].mxu1 }
 0x1d2   :  { %508 = vst [vmem:[%s823_s4 + $0x10] sm:$0xff] %v452_v50  ;;  %v455_v54 = vadd.f32 %v634_v53, %v542_v48  ;;  %v446_v55 = vpop.f32.mrb[3].mxu1 }
 0x1d3   :  { %506 = vst [vmem:[%s823_s4] sm:$0xff] %v444_v52  ;;  %v447_v56 = vadd.f32 %v542_v48, %v446_v55 }
 0x1d4   :  { %509 = vst [vmem:[%s823_s4 + $0x18] sm:$0xff] %v455_v54 }
 0x1d5   :  { %507 = vst [vmem:[%s823_s4 + $0x8] sm:$0xff] %v447_v56 }
 0x1d7   :  { %v637_v57 = vpop.f32.mrb[4].mxu1 }
 0x1d8   :  { %v468_v58 = vadd.f32 %v637_v57, %v542_v48  ;;  %v459_v59 = vpop.f32.mrb[5].mxu1 }
 0x1d9   :  { %v460_v60 = vadd.f32 %v542_v48, %v459_v59  ;;  %v638_v61 = vpop.f32.mrb[6].mxu1 }
 0x1da   :  { %512 = vst [vmem:[%s823_s4 + $0x30] sm:$0xff] %v468_v58  ;;  %v471_v62 = vadd.f32 %v638_v61, %v542_v48  ;;  %v462_v63 = vpop.f32.mrb[7].mxu1 }
 0x1db   :  { %510 = vst [vmem:[%s823_s4 + $0x20] sm:$0xff] %v460_v60  ;;  %v463_v0 = vadd.f32 %v542_v48, %v462_v63 }
 0x1dc   :  { %513 = vst [vmem:[%s823_s4 + $0x38] sm:$0xff] %v471_v62 }
 0x1dd   :  { %511 = vst [vmem:[%s823_s4 + $0x28] sm:$0xff] %v463_v0 }
 0x1df   :  { %v641_v1 = vpop.f32.mrb[8].mxu1 }
 0x1e0   :  { %v484_v2 = vadd.f32 %v641_v1, %v542_v48  ;;  %v475_v3 = vpop.f32.mrb[9].mxu1 }
 0x1e1   :  { %v476_v4 = vadd.f32 %v542_v48, %v475_v3  ;;  %v642_v5 = vpop.f32.mrb[10].mxu1 }
 0x1e2   :  { %516 = vst [vmem:[%s823_s4 + $0x50] sm:$0xff] %v484_v2  ;;  %v487_v6 = vadd.f32 %v642_v5, %v542_v48  ;;  %v478_v7 = vpop.f32.mrb[11].mxu1 }
 0x1e3   :  { %514 = vst [vmem:[%s823_s4 + $0x40] sm:$0xff] %v476_v4  ;;  %v479_v8 = vadd.f32 %v542_v48, %v478_v7 }
 0x1e4   :  { %517 = vst [vmem:[%s823_s4 + $0x58] sm:$0xff] %v487_v6 }
 0x1e5   :  { %515 = vst [vmem:[%s823_s4 + $0x48] sm:$0xff] %v479_v8 }
 0x1e7   :  { %v645_v9 = vpop.f32.mrb[12].mxu1 }
 0x1e8   :  { %v500_v10 = vadd.f32 %v645_v9, %v542_v48  ;;  %v491_v11 = vpop.f32.mrb[13].mxu1 }
 0x1e9   :  { %v492_v12 = vadd.f32 %v542_v48, %v491_v11  ;;  %v646_v13 = vpop.f32.mrb[14].mxu1 }
 0x1ea   :  { %520 = vst [vmem:[%s823_s4 + $0x70] sm:$0xff] %v500_v10  ;;  %v503_v14 = vadd.f32 %v646_v13, %v542_v48  ;;  %v494_v15 = vpop.f32.mrb[15].mxu1 }
 0x1eb   :  { %518 = vst [vmem:[%s823_s4 + $0x60] sm:$0xff] %v492_v12  ;;  %v495_v16 = vadd.f32 %v542_v48, %v494_v15 }
 0x1ec   :  { %521 = vst [vmem:[%s823_s4 + $0x78] sm:$0xff] %v503_v14 }
 0x1ed   :  { %519 = vst [vmem:[%s823_s4 + $0x68] sm:$0xff] %v495_v16 }

</bundles_post_ra>
